<compile_context>
chip_gen: v7x
topology: tpu7x:2x2x1
jax: 0.10.0
libtpu: 0.0.40
codegen_flags: <defaults>
</compile_context>

<pallas_src>
import functools
import math

import jax
import jax.numpy as jnp
from jax import lax
from jax.experimental import pallas as pl
from jax.experimental.pallas import tpu as pltpu


def _attn_kernel(q_ref, k_ref, v_ref, bias_ref, o_ref, *, flatten_out):
    q = q_ref[...].astype(jnp.float32)      # (T, S, D)
    k = k_ref[...].astype(jnp.float32)      # (T, S, D)
    v = v_ref[...]                          # (T, S, D)
    b = bias_ref[...].astype(jnp.float32)   # (T, S, S)

    d = q.shape[-1]
    # Scale q (T*S*D multiplies) instead of the (T*S*S) score matrix.
    q = q * (1.0 / math.sqrt(d))

    # Batched q @ k^T without an explicit transpose: contract the minor dims,
    # batch over the head dim.  MXU matmul, f32 accumulation.
    qk = lax.dot_general(
        q, k,
        dimension_numbers=(((2,), (2,)), ((0,), (0,))),
        preferred_element_type=jnp.float32,
    ) + b                                                   # (T, S, S)

    # Numerically-stable softmax along the key axis.
    qk_max = jnp.max(qk, axis=-1, keepdims=True)
    p = jnp.exp(qk - qk_max)
    denom = jnp.sum(p, axis=-1, keepdims=True)
    attn = p * pl.reciprocal(denom, approx=True)            # EUP vrcp slot

    out = lax.dot_general(
        attn.astype(v.dtype), v,
        dimension_numbers=(((2,), (1,)), ((0,), (0,))),
        preferred_element_type=jnp.float32,
    )                                                       # (T, S, D)

    if flatten_out:
        t, s, dd = out.shape
        # Lane-dense (T, S*D) slab -> unmasked full-lane stores.
        o_ref[0] = out.reshape(t, s * dd).astype(o_ref.dtype)
    else:
        o_ref[...] = out.astype(o_ref.dtype)


def _pick_heads_per_block(bh, s, d, itemsize):
    """Heads per grid step: as big as VMEM allows, but keep >=2 grid steps."""
    per_head = itemsize * (3 * s * d + s * s + s * d)   # q,k,v,bias,out block rows
    budget = 6 * 1024 * 1024   # one block copy; ~2x with double buffering stays
                               # under the default scoped VMEM on v5e/v6e/v7x
    cap = max(1, budget // max(per_head, 1))
    if bh >= 2:
        cap = min(cap, max(1, (bh + 1) // 2))   # leave >=2 steps for v7x's 2 TCs
    t = 1
    for cand in range(1, min(bh, cap) + 1):     # largest divisor of BH <= cap
        if bh % cand == 0:
            t = cand
    return t


def sdpa_pallas(q, k, v, bias):
    """q, k, v: (B, H, S, D); bias: (B, H, S, S). Returns (B, H, S, D)."""
    B, H, S, D = q.shape
    BH = B * H
    qf = q.reshape(BH, S, D)
    kf = k.reshape(BH, S, D)
    vf = v.reshape(BH, S, D)
    bf = bias.reshape(BH, S, S)

    T = _pick_heads_per_block(BH, S, D, jnp.dtype(q.dtype).itemsize)
    n_blocks = BH // T

    # Lane-dense output layout when D is sub-lane-width but S*D is a multiple
    # of 128 (e.g. S=8, D=32 -> 256 lanes).
    flatten_out = (D % 128 != 0) and ((S * D) % 128 == 0)

    if flatten_out:
        out_shape = jax.ShapeDtypeStruct((n_blocks, T, S * D), q.dtype)
        out_spec = pl.BlockSpec((1, T, S * D), lambda i: (i, 0, 0))
    else:
        out_shape = jax.ShapeDtypeStruct((BH, S, D), q.dtype)
        out_spec = pl.BlockSpec((T, S, D), lambda i: (i, 0, 0))

    kernel = functools.partial(_attn_kernel, flatten_out=flatten_out)

    out = pl.pallas_call(
        kernel,
        out_shape=out_shape,
        grid_spec=pltpu.PrefetchScalarGridSpec(
            num_scalar_prefetch=0,
            grid=(n_blocks,),
            in_specs=[
                pl.BlockSpec((T, S, D), lambda i: (i, 0, 0)),
                pl.BlockSpec((T, S, D), lambda i: (i, 0, 0)),
                pl.BlockSpec((T, S, D), lambda i: (i, 0, 0)),
                pl.BlockSpec((T, S, S), lambda i: (i, 0, 0)),
            ],
            out_specs=out_spec,
        ),
        compiler_params=pltpu.CompilerParams(
            dimension_semantics=("parallel",)),
    )(qf, kf, vf, bf)

    return out.reshape(B, H, S, D)


def sdpa_ref(q, k, v, bias):
    d = q.shape[-1]
    qk = jnp.einsum("bhsd,bhtd->bhst", q, k) / math.sqrt(d) + bias
    attn = jax.nn.softmax(qk, axis=-1)
    return jnp.einsum("bhst,bhtd->bhsd", attn, v)


if __name__ == "__main__":
    B, H, S, D = 2, 4, 8, 32
    key = jax.random.PRNGKey(0)
    kq, kk, kv, kb = jax.random.split(key, 4)
    q = jax.random.normal(kq, (B, H, S, D), dtype=jnp.float32)
    k = jax.random.normal(kk, (B, H, S, D), dtype=jnp.float32)
    v = jax.random.normal(kv, (B, H, S, D), dtype=jnp.float32)
    bias = jax.random.normal(kb, (B, H, S, S), dtype=jnp.float32)

    out = sdpa_pallas(q, k, v, bias)
    jax.block_until_ready(out)

    ref = sdpa_ref(q, k, v, bias)
    # Tolerance accounts for the EUP approx reciprocal in the softmax denom.
    assert jnp.allclose(out, ref, atol=2e-3, rtol=2e-3), "mismatch vs reference"

    print("KERNEL_OK")
</pallas_src>

<mosaic_0001>
module attributes {stable_mosaic.version = 11 : i64} {
  func.func @_attn_kernel(%arg0: i32, %arg1: memref<4x8x32xf32, #tpu.memory_space<vmem>>, %arg2: memref<4x8x32xf32, #tpu.memory_space<vmem>>, %arg3: memref<4x8x32xf32, #tpu.memory_space<vmem>>, %arg4: memref<4x8x8xf32, #tpu.memory_space<vmem>>, %arg5: memref<1x4x256xf32, #tpu.memory_space<vmem>>) attributes {dimension_semantics = [#tpu.dimension_semantics<parallel>], iteration_bounds = array<i64: 2>, scalar_prefetch = 0 : i64, scratch_operands = 0 : i64, tpu.core_type = #tpu.core_type<tc>, window_params = [{transform_indices = @transform_0, window_bounds = array<i64: 4, 8, 32>}, {transform_indices = @transform_1, window_bounds = array<i64: 4, 8, 32>}, {transform_indices = @transform_2, window_bounds = array<i64: 4, 8, 32>}, {transform_indices = @transform_3, window_bounds = array<i64: 4, 8, 8>}, {transform_indices = @transform_4, window_bounds = array<i64: 1, 4, 256>}]} {
    %c0 = arith.constant 0 : index
    %c0_0 = arith.constant 0 : index
    %c0_1 = arith.constant 0 : index
    %0 = vector.load %arg1[%c0, %c0_0, %c0_1] : memref<4x8x32xf32, #tpu.memory_space<vmem>>, vector<4x8x32xf32>
    %c0_2 = arith.constant 0 : index
    %c0_3 = arith.constant 0 : index
    %c0_4 = arith.constant 0 : index
    %1 = vector.load %arg2[%c0_2, %c0_3, %c0_4] : memref<4x8x32xf32, #tpu.memory_space<vmem>>, vector<4x8x32xf32>
    %c0_5 = arith.constant 0 : index
    %c0_6 = arith.constant 0 : index
    %c0_7 = arith.constant 0 : index
    %2 = vector.load %arg3[%c0_5, %c0_6, %c0_7] : memref<4x8x32xf32, #tpu.memory_space<vmem>>, vector<4x8x32xf32>
    %c0_8 = arith.constant 0 : index
    %c0_9 = arith.constant 0 : index
    %c0_10 = arith.constant 0 : index
    %3 = vector.load %arg4[%c0_8, %c0_9, %c0_10] : memref<4x8x8xf32, #tpu.memory_space<vmem>>, vector<4x8x8xf32>
    %cst = arith.constant 0.176776692 : f32
    %4 = vector.broadcast %cst : f32 to vector<4x8x32xf32>
    %5 = arith.mulf %0, %4 : vector<4x8x32xf32>
    %cst_11 = arith.constant dense<0.000000e+00> : vector<4x8x8xf32>
    %6 = tpu.matmul %5, %1, %cst_11 {dimension_numbers = #tpu.dot_dimension_numbers<[2], [2], [1], [1], [0, 0, 0, 1, 1, 1], [0], [0]>} : vector<4x8x32xf32>, vector<4x8x32xf32>, vector<4x8x8xf32> -> vector<4x8x8xf32>
    %7 = arith.addf %6, %3 : vector<4x8x8xf32>
    %cst_12 = arith.constant dense<0xFF800000> : vector<4x8xf32>
    %8 = vector.multi_reduction <maximumf>, %7, %cst_12 [2] : vector<4x8x8xf32> to vector<4x8xf32>
    %9 = vector.shape_cast %8 : vector<4x8xf32> to vector<4x8x1xf32>
    %10 = vector.broadcast %9 : vector<4x8x1xf32> to vector<4x8x8xf32>
    %11 = arith.subf %7, %10 : vector<4x8x8xf32>
    %12 = math.exp %11 : vector<4x8x8xf32>
    %cst_13 = arith.constant dense<0.000000e+00> : vector<4x8xf32>
    %13 = vector.multi_reduction <add>, %12, %cst_13 [2] : vector<4x8x8xf32> to vector<4x8xf32>
    %14 = vector.shape_cast %13 : vector<4x8xf32> to vector<4x8x1xf32>
    %15 = tpu.reciprocal %14 {approx = true} : vector<4x8x1xf32> -> vector<4x8x1xf32>
    %16 = vector.broadcast %15 : vector<4x8x1xf32> to vector<4x8x8xf32>
    %17 = arith.mulf %12, %16 : vector<4x8x8xf32>
    %cst_14 = arith.constant dense<0.000000e+00> : vector<4x8x32xf32>
    %18 = tpu.matmul %17, %2, %cst_14 {dimension_numbers = #tpu.dot_dimension_numbers<[2], [1], [1], [2], [0, 0, 0, 1, 1, 2], [0], [0]>} : vector<4x8x8xf32>, vector<4x8x32xf32>, vector<4x8x32xf32> -> vector<4x8x32xf32>
    %19 = vector.shape_cast %18 : vector<4x8x32xf32> to vector<4x256xf32>
    %c0_15 = arith.constant 0 : index
    %c0_16 = arith.constant 0 : index
    %c0_17 = arith.constant 0 : index
    %20 = vector.load %arg5[%c0_15, %c0_16, %c0_17] : memref<1x4x256xf32, #tpu.memory_space<vmem>>, vector<1x4x256xf32>
    %21 = vector.shape_cast %20 : vector<1x4x256xf32> to vector<4x256xf32>
    %22 = vector.shape_cast %19 : vector<4x256xf32> to vector<1x4x256xf32>
    tpu.vector_store %arg5[%c0_15, %c0_16, %c0_17], %22 {strides = array<i32>} : memref<1x4x256xf32, #tpu.memory_space<vmem>>, vector<1x4x256xf32>,
    return
  }
  func.func @transform_0(%arg0: i32) -> (i32, i32, i32) {
    %c0_i32 = arith.constant 0 : i32
    %c0_i32_0 = arith.constant 0 : i32
    %c0_i32_1 = arith.constant 0 : i32
    return %arg0, %c0_i32, %c0_i32_0 : i32, i32, i32
  }
  func.func @transform_1(%arg0: i32) -> (i32, i32, i32) {
    %c0_i32 = arith.constant 0 : i32
    %c0_i32_0 = arith.constant 0 : i32
    %c0_i32_1 = arith.constant 0 : i32
    return %arg0, %c0_i32, %c0_i32_0 : i32, i32, i32
  }
  func.func @transform_2(%arg0: i32) -> (i32, i32, i32) {
    %c0_i32 = arith.constant 0 : i32
    %c0_i32_0 = arith.constant 0 : i32
    %c0_i32_1 = arith.constant 0 : i32
    return %arg0, %c0_i32, %c0_i32_0 : i32, i32, i32
  }
  func.func @transform_3(%arg0: i32) -> (i32, i32, i32) {
    %c0_i32 = arith.constant 0 : i32
    %c0_i32_0 = arith.constant 0 : i32
    %c0_i32_1 = arith.constant 0 : i32
    return %arg0, %c0_i32, %c0_i32_0 : i32, i32, i32
  }
  func.func @transform_4(%arg0: i32) -> (i32, i32, i32) {
    %c0_i32 = arith.constant 0 : i32
    %c0_i32_0 = arith.constant 0 : i32
    %c0_i32_1 = arith.constant 0 : i32
    return %arg0, %c0_i32, %c0_i32_0 : i32, i32, i32
  }
}

</mosaic_0001>

<bundles_post_ra>
// kernel: tpu_custom_call.1
= control target key start
LH: loop header
LB: loop body
LE: loop exit
PB: predicated region body
PF: predicated region fallthrough
CT: control target
= control target key end

     0   :  { %s2037_s0 = inlined_call_operand.hbm [shape: f32[8,8,32], index: 0, kind: input, shape index: {}]   ;;  %s2038_s1 = inlined_call_operand.hbm [shape: f32[8,8,32], index: 1, kind: input, shape index: {}]   ;;  %s2039_s2 = inlined_call_operand.hbm [shape: f32[8,8,32], index: 2, kind: input, shape index: {}]   ;;  %s2040_s3 = inlined_call_operand.hbm [shape: f32[8,8,8], index: 3, kind: input, shape index: {}]   ;;  %s2041_s4 = inlined_call_operand.hbm [shape: f32[2,4,256], index: 4, kind: output, shape index: {}]  }
   0x1   :  { %2048 = sst [smem:[#allocation16_spill]] %s2037_s0 }
   0x2   :  { %2049 = sst [smem:[#allocation17_spill]] %s2038_s1 }
   0x3   :  { %9 = vsyncpa [#allocation3], 0 }
   0x4   :  { %11 = vsyncpa [#allocation3 + $0x1], 0 }
   0x5   :  { %12 = vsyncpa [#allocation6], 0 }
   0x6   :  { %14 = vsyncpa [#allocation6 + $0x1], 0 }
   0x7   :  { %15 = vsyncpa [#allocation9], 0 }
   0x8   :  { %17 = vsyncpa [#allocation9 + $0x1], 0 }
   0x9   :  { %18 = vsyncpa [#allocation4], 0 }
   0xa   :  { %20 = vsyncpa [#allocation4 + $0x1], 0  ;;  %s1675_s15 = smov 0   ;;  %s1677_s16 = smov 0  }
   0xb   :  { %s1679_s17 = smov 0   ;;  %s1681_s18 = smov 0  }
   0xc LB: > { %s1696_s19 = sadd.s32 4294967295, %s1634_s18   ;;  %s1255_s20 = sadd.s32 4294967294, %s1634_s18   ;;  %s1634_s18 = sphi %s1681_s18, %s2071_s18   ;;  %s1630_s17 = sphi %s1679_s17, %s2070_s17   ;;  %s1626_s16 = sphi %s1677_s16, %s2069_s16   ;;  %s1622_s15 = sphi %s1675_s15, %s2068_s15  }
   0xd   : > { %s1700_s21 = sadd.s32 1, %s1634_s18   ;;  %s33_s22 = sadd.s32 1, %s1630_s17 }
   0xe   : > { %s30_s23 = ssub.s32 %s1634_s18, %s1700_s21  ;;  %p40_p0 = scmp.ne.s32.totalorder %s1630_s17, %s1626_s16 }
   0xf   : > { %p31_p1 = scmp.eq.s32.totalorder %s30_s23, 0  ;;  %p41_p2 = scmp.eq.s32.totalorder %s1634_s18, 0 }
  0x10   : > { %p46_p3 = scmp.ne.s32.totalorder %s1626_s16, %s1622_s15  ;;  %p47_p4 = scmp.eq.s32.totalorder %s1696_s19, 0 }
  0x11   : > { %s1712_s24 = scalar_select %p31_p1, %s1630_s17, %s33_s22  }
  0x12   : > { %p42_p5 = por %p41_p2, %p40_p0  ;;  %p1714_p6 = por %p47_p4, %p46_p3 }
  0x13   : > { %2050 = sst [smem:[#allocation15_spill]] %s1712_s24  ;;  %p148_p7 = scmp.eq.s32.totalorder %s1696_s19, 1 }
  0x14   : > { %s2051_s25 = scalar_select %p1714_p6, 1, 0 }
  0x15   : > { %p154_p8 = scmp.eq.s32.totalorder %s1255_s20, 1  ;;  %p1381_p10 = scmp.lt.s32.totalorder %s1634_s18, 2 }
  0x16   : > { %p1721_p11 = por %p148_p7, %p40_p0  ;;  %s1730_s28 = sand.u32 1, %s1630_s17  }
  0x17   : > { %p1725_p12 = por %p154_p8, %p46_p3  ;;  %s1733_s29 = sshll.u32 %s1634_s18, 9 }
  0x18   : > { %s2052_s26 = scalar_select %p1721_p11, 1, 0 }
  0x19   : > { %s2053_s27 = scalar_select %p1725_p12, 1, 0 }
  0x1a   : > { %s1736_s30 = sshll.u32 %s1730_s28, 5  ;;  %p1738_p13 = pnand %p1381_p10, %p42_p5 }
  0x1b   : > { %s195_s6 = sand.u32 1, %s1634_s18   ;;  %s2055_s1 = sld [smem:[#allocation17_spill]] }
  0x1c   : > { %s199_s10 = scalar_lea.vmem [#allocation5], %s1736_s30  ;;  %s1753_s12 = scalar_lea.sflag [#allocation6], %s195_s6 }
  0x1d   : > { %s206_s11 = sshll.u32 %s199_s10, 4  ;;  %p1759_p2 = pneg %p1738_p13  ;;  %s1750_s11 = int_to_ptr.vmem [resolvable:$true] %s206_s11 }
  0x21   : > { %s1747_s9 = scalar_lea.hbm %s2055_s1, %s1733_s29  ;;  %s1445_s23 = scalar_lea.hbm %s2055_s1, 1024 }
  0x22   : > { %s1440_s13 = scalar_lea.hbm %s1747_s9, 512  ;;  %p1446_p5 = scmp.lt.u32.totalorder %s1747_s9, %s2055_s1 }
  0x23   : > { %p1441_p1 = scmp.ne.s32.totalorder %s1747_s9, %s1440_s13  ;;  %p1447_p7 = scmp.lt.u32.totalorder %s1445_s23, %s1440_s13 }
  0x24   : > { %p1449_p10 = scmp.lt.u32.totalorder %s1440_s13, %s1747_s9 }
  0x25   : > { %p1443_p3 = pnand %p1759_p2, %p1441_p1  ;;  %p1448_p8 = por %p1447_p7, %p1446_p5 }
  0x27   : > { %p1444_p4 = pneg %p1443_p3  ;;  %p1450_p9 = por %p1449_p10, %p1448_p8 }
  0x29   : > { %p1451_p0 = pnand %p1450_p9, %p1444_p4 }
  0x2b   : > { %1454 = shalt.err (!%p1451_p0)
}
  0x2c   : > { %s1455_s6 = scalar_lea.vmem %s1750_s11, 512  ;;  %s1636_s10 = smov [#allocation5]  }
  0x2d   : > { %p1456_p1 = scmp.ne.s32.totalorder %s1750_s11, %s1455_s6  ;;  %s1460_s20 = sshll.u32 %s1636_s10, 4  ;;  %s1461_s20 = int_to_ptr.vmem [resolvable:$false] %s1460_s20 }
  0x2e   : > { %s1462_s22 = scalar_lea.vmem %s1461_s20, 1024  ;;  %p1463_p11 = scmp.lt.s32.totalorder %s1750_s11, %s1461_s20 }
  0x2f   : > { %p1458_p3 = pnand %p1456_p1, %p1759_p2  ;;  %p1464_p6 = scmp.lt.s32.totalorder %s1462_s22, %s1455_s6 }
  0x31   : > { %p1459_p12 = pneg %p1458_p3  ;;  %p1465_p5 = por %p1464_p6, %p1463_p11 }
  0x33   : > { %p1466_p7 = pnand %p1465_p5, %p1459_p12 }
  0x35   : > { %1469 = shalt.err (!%p1466_p7)
}
  0x36   : > { %s2044_s13 = smov 128   ;;  %s2046_s23 = smov 8  }
  0x37   : > { %1370 = dma.hbm_to_vmem [thread:$0]  (!%p1738_p13), %s1747_s9, 512, %s1750_s11, %s1753_s12, %s2044_s13, %s2044_s13, %s2046_s23  }
  0x38   : > { %p256_p6 = scmp.lt.s32.totalorder %s1634_s18, 3  ;;  %s2057_s0 = sld [smem:[#allocation16_spill]] }
  0x39   : > { %p2058_p9 = scmp.ge.s32.totalorder %s1634_s18, 1  ;;  %s178_s20 = scalar_lea.vmem [#allocation2], %s1736_s30 }
  0x3a   : > { %s185_s22 = sshll.u32 %s178_s20, 4  ;;  %s175_s9 = scalar_lea.sflag [#allocation3], %s1730_s28  ;;  %s1800_s22 = int_to_ptr.vmem [resolvable:$true] %s185_s22 }
  0x3b   : > { %p1795_p11 = pnand %p2058_p9, %p256_p6 }
  0x3d   : > { %s2059_s10 = scalar_select %p1795_p11, 1, 0 }
  0x3e   : > { %s1791_s6 = scalar_lea.hbm %s2057_s0, %s1733_s29  ;;  %s1475_s13 = scalar_lea.hbm %s2057_s0, 1024 }
  0x3f   : > { %s1470_s11 = scalar_lea.hbm %s1791_s6, 512  ;;  %p1476_p8 = scmp.lt.u32.totalorder %s1791_s6, %s2057_s0 }
  0x40   : > { %p1471_p12 = scmp.ne.s32.totalorder %s1791_s6, %s1470_s11  ;;  %p1477_p10 = scmp.lt.u32.totalorder %s1475_s13, %s1470_s11 }
  0x41   : > { %p1479_p3 = scmp.lt.u32.totalorder %s1470_s11, %s1791_s6 }
  0x42   : > { %p1473_p0 = pnand %p1471_p12, %p1759_p2  ;;  %p1478_p1 = por %p1477_p10, %p1476_p8 }
  0x44   : > { %p1474_p4 = pneg %p1473_p0  ;;  %p1480_p5 = por %p1479_p3, %p1478_p1 }
  0x46   : > { %p1481_p7 = pnand %p1480_p5, %p1474_p4 }
  0x48   : > { %1484 = shalt.err (!%p1481_p7)
}
  0x49   : > { %s1485_s20 = scalar_lea.vmem %s1800_s22, 512  ;;  %s1639_s7 = smov [#allocation2]  }
  0x4a   : > { %p1486_p6 = scmp.ne.s32.totalorder %s1800_s22, %s1485_s20  ;;  %s1490_s8 = sshll.u32 %s1639_s7, 4  ;;  %s1491_s8 = int_to_ptr.vmem [resolvable:$false] %s1490_s8 }
  0x4b   : > { %s1492_s1 = scalar_lea.vmem %s1491_s8, 1024  ;;  %p1493_p0 = scmp.lt.s32.totalorder %s1800_s22, %s1491_s8 }
  0x4c   : > { %p1488_p9 = pnand %p1486_p6, %p1759_p2  ;;  %p1494_p11 = scmp.lt.s32.totalorder %s1492_s1, %s1485_s20 }
  0x4e   : > { %p1489_p12 = pneg %p1488_p9  ;;  %p1495_p8 = por %p1494_p11, %p1493_p0 }
  0x50   : > { %p1496_p10 = pnand %p1495_p8, %p1489_p12 }
  0x52   : > { %1499 = shalt.err (!%p1496_p10)
}
  0x53   : > { %s2060_s13 = smov 8   ;;  %s2061_s23 = smov 128  }
  0x54   : > { %1367 = dma.hbm_to_vmem [thread:$0]  (!%p1738_p13), %s1791_s6, 512, %s1800_s22, %s175_s9, %s2061_s23, %s2061_s23, %s2060_s13  }
  0x55   : > { %s1833_s20 = scalar_lea.hbm %s2039_s2, %s1733_s29  ;;  %s220_s8 = scalar_lea.vmem [#allocation7], %s1736_s30 }
  0x56   : > { %s227_s1 = sshll.u32 %s220_s8, 4  ;;  %s1500_s0 = scalar_lea.hbm %s1833_s20, 512  ;;  %s1836_s1 = int_to_ptr.vmem [resolvable:$true] %s227_s1 }
  0x57   : > { %p1501_p11 = scmp.ne.s32.totalorder %s1833_s20, %s1500_s0  ;;  %s1505_s22 = scalar_lea.hbm %s2039_s2, 1024 }
  0x58   : > { %p1506_p3 = scmp.lt.u32.totalorder %s1833_s20, %s2039_s2  ;;  %p1507_p5 = scmp.lt.u32.totalorder %s1505_s22, %s1500_s0 }
  0x59   : > { %p1503_p4 = pnand %p1501_p11, %p1759_p2  ;;  %p1509_p6 = scmp.lt.u32.totalorder %s1500_s0, %s1833_s20 }
  0x5a   : > { %p1508_p7 = por %p1507_p5, %p1506_p3 }
  0x5b   : > { %p1504_p1 = pneg %p1503_p4 }
  0x5c   : > { %p1510_p9 = por %p1509_p6, %p1508_p7 }
  0x5e   : > { %p1511_p12 = pnand %p1510_p9, %p1504_p1 }
  0x60   : > { %1514 = shalt.err (!%p1511_p12)
}
  0x61   : > { %s1515_s7 = scalar_lea.vmem %s1836_s1, 512  ;;  %s1640_s24 = smov [#allocation7]  }
  0x62   : > { %p1516_p0 = scmp.ne.s32.totalorder %s1836_s1, %s1515_s7  ;;  %s1520_s8 = sshll.u32 %s1640_s24, 4  ;;  %s1521_s8 = int_to_ptr.vmem [resolvable:$false] %s1520_s8 }
  0x63   : > { %s1522_s6 = scalar_lea.vmem %s1521_s8, 1024  ;;  %p1523_p11 = scmp.lt.s32.totalorder %s1836_s1, %s1521_s8 }
  0x64   : > { %p1518_p8 = pnand %p1516_p0, %p1759_p2  ;;  %p1524_p4 = scmp.lt.s32.totalorder %s1522_s6, %s1515_s7 }
  0x66   : > { %p1519_p10 = pneg %p1518_p8  ;;  %p1525_p3 = por %p1524_p4, %p1523_p11 }
  0x68   : > { %p1526_p5 = pnand %p1525_p3, %p1519_p10 }
  0x6a   : > { %1529 = shalt.err (!%p1526_p5)
}
  0x6b   : > { %1373 = dma.hbm_to_vmem [thread:$0]  (!%p1738_p13), %s1833_s20, 512, %s1836_s1, %s1753_s12, %s2061_s23, %s2061_s23, %s2060_s13  }
  0x6c   : > { %s1867_s9 = scalar_lea.hbm %s2040_s3, %s1733_s29  ;;  %s241_s11 = scalar_lea.vmem [#allocation8], %s1736_s30 }
  0x6d   : > { %s248_s7 = sshll.u32 %s241_s11, 4  ;;  %s238_s24 = scalar_lea.sflag [#allocation9], %s1730_s28  ;;  %s1870_s7 = int_to_ptr.vmem [resolvable:$true] %s248_s7 }
  0x6e   : > { %s1530_s8 = scalar_lea.hbm %s1867_s9, 512  ;;  %s1535_s1 = scalar_lea.hbm %s2040_s3, 1024 }
  0x6f   : > { %p1531_p1 = scmp.ne.s32.totalorder %s1867_s9, %s1530_s8  ;;  %p1536_p9 = scmp.lt.u32.totalorder %s1867_s9, %s2040_s3 }
  0x70   : > { %p1537_p12 = scmp.lt.u32.totalorder %s1535_s1, %s1530_s8  ;;  %p1539_p8 = scmp.lt.u32.totalorder %s1530_s8, %s1867_s9 }
  0x71   : > { %p1533_p7 = pnand %p1531_p1, %p1759_p2 }
  0x72   : > { %p1538_p0 = por %p1537_p12, %p1536_p9 }
  0x73   : > { %p1534_p6 = pneg %p1533_p7 }
  0x74   : > { %p1540_p10 = por %p1539_p8, %p1538_p0 }
  0x76   : > { %p1541_p11 = pnand %p1540_p10, %p1534_p6 }
  0x78   : > { %1544 = shalt.err (!%p1541_p11)
}
  0x79   : > { %s1545_s30 = scalar_lea.vmem %s1870_s7, 512  ;;  %s1641_s0 = smov [#allocation8]  }
  0x7a   : > { %p1546_p4 = scmp.ne.s32.totalorder %s1870_s7, %s1545_s30  ;;  %s1550_s22 = sshll.u32 %s1641_s0, 4  ;;  %s1551_s22 = int_to_ptr.vmem [resolvable:$false] %s1550_s22 }
  0x7b   : > { %s1552_s11 = scalar_lea.vmem %s1551_s22, 1024  ;;  %p1553_p1 = scmp.lt.s32.totalorder %s1870_s7, %s1551_s22 }
  0x7c   : > { %p1548_p3 = pnand %p1546_p4, %p1759_p2  ;;  %p1554_p7 = scmp.lt.s32.totalorder %s1552_s11, %s1545_s30 }
  0x7e   : > { %p1549_p5 = pneg %p1548_p3  ;;  %p1555_p9 = por %p1554_p7, %p1553_p1 }
  0x80   : > { %p1556_p12 = pnand %p1555_p9, %p1549_p5 }
  0x82   : > { %1559 = shalt.err (!%p1556_p12)
}
  0x83   : > { %1376 = dma.hbm_to_vmem [thread:$0]  (!%p1738_p13), %s1867_s9, 512, %s1870_s7, %s238_s24, %s2061_s23, %s2061_s23, %s2060_s13  }
  0x84   : > { %p2062_p2 = scmp.ne.s32.totalorder %s2059_s10, 0 }
  0x85   : > { %s1902_s14 = sand.u32 (!%p2062_p2), 1, %s1626_s16   ;;  %p2063_p6 = scmp.ne.s32.totalorder (!%p2062_p2), %s2051_s25, 0 }
  0x86   : > { %260 = sbr.rel (%p2062_p2) target bundleno = 1054 (0x41e), region = 36  ;;  %s1271_s8 = sshll.u32 (!%p2062_p2), %s1902_s14, 5 }
  0x87   : > { %s263_s12 = scalar_lea.sflag (!%p2062_p2), [#allocation3], %s1902_s14  ;;  %s1906_s5 = scalar_lea.vmem (!%p2062_p2), [#allocation2], %s1271_s8 }
  0x8d   : > { %1605 = dma.done.wait (%p2063_p6), %s263_s12, 512  }
  0x8e   : > { %1607 = vsyncadd (%p2063_p6), %s263_s12, 4294966784  ;;  %s271_s28 = sand.u32 1, %s1696_s19   ;;  %s275_s13 = scalar_lea.vmem [#allocation5], %s1271_s8 }
  0x8f   : > { %s272_s10 = scalar_lea.sflag [#allocation6], %s271_s28 }
  0x90   : > { %1609 = dma.done.wait (%p2063_p6), %s272_s10, 1024  }
  0x91   : > { %1611 = vsyncadd (%p2063_p6), %s272_s10, 4294966272  ;;  %s1917_s23 = scalar_lea.vmem [#allocation7], %s1271_s8  ;;  %s290_s9 = scalar_lea.sflag [#allocation9], %s1902_s14 }
  0x92   : > { %s1920_s7 = scalar_lea.vmem [#allocation8], %s1271_s8 }
  0x93   : > { %1613 = dma.done.wait (%p2063_p6), %s290_s9, 512  }
  0x94   : > { %1615 = vsyncadd (%p2063_p6), %s290_s9, 4294966784  ;;  %v1642_v0 = vmov 0.0   ;;  %vm1643_vm0 = vmmov 0   ;;  %vm357_vm1 = vcmask 261120   ;;  %v341_v1 = vld [vmem:[%s275_s13] sm:$0xff]  ;;  %v342_v3 = vld [vmem:[%s275_s13 + $0x8] sm:$0xff] }
  0x95   : > { %1314 = vmatprep.subr.mxu0 %v1642_v0  ;;  %1316 = vmatprep.mubr.msk.f32.mxu0 %vm1643_vm0, %v1642_v0  ;;  %v337_v2 = vld [vmem:[%s1906_s5] sm:$0xff]  ;;  %v338_v5 = vld [vmem:[%s1906_s5 + $0x8] sm:$0xff]  ;;  %v339_v6 = vld [vmem:[%s1906_s5 + $0x10] sm:$0xff]  ;;  %vm662_vm2 = vcmask 64512   ;;  %s1646_s25 = smov 64   ;;  %s1647_s24 = smov 32  }
  0x96   : > { %1319 = vmatprep.subr.mxu1 %v1642_v0  ;;  %1321 = vmatprep.mubr.msk.f32.mxu1 %vm1643_vm0, %v1642_v0  ;;  %v353_v4 = vmul.f32 0.17677669, %v337_v2  ;;  %v343_v7 = vld [vmem:[%s275_s13 + $0x10] sm:$0xff]  ;;  %v354_v8 = vmul.f32 0.17677669, %v338_v5  ;;  %v340_v9 = vld [vmem:[%s1906_s5 + $0x18] sm:$0xff] }
  0x97   : > { %1315 = vmatpush3.xpose.msk.msra.mxu0 %vm357_vm1, %v341_v1  ;;  %1320 = vmatpush3.xpose.msk.msra.mxu1 %vm357_vm1, %v342_v3  ;;  %v344_v10 = vld [vmem:[%s275_s13 + $0x18] sm:$0xff]  ;;  %v355_v11 = vmul.f32 0.17677669, %v339_v6  ;;  %v356_v12 = vmul.f32 0.17677669, %v340_v9  ;;  %v349_v13 = vld [vmem:[%s1920_s7] sm:$0xff] }
  0x98   : > { %1324 = vmatprep.subr.mxu0 %v1642_v0  ;;  %1329 = vmatprep.subr.mxu1 %v1642_v0  ;;  %v350_v14 = vld [vmem:[%s1920_s7 + $0x8] sm:$0xff]  ;;  %v351_v21 = vld [vmem:[%s1920_s7 + $0x10] sm:$0xff]  ;;  %v352_v23 = vld [vmem:[%s1920_s7 + $0x18] sm:$0xff]  ;;  %v1644_v6 = vmov 1983009808   ;;  %s1648_s20 = smov 96  }
  0x99   : > { %v345_v53 = vld [vmem:[%s1917_s23] sm:$0xff]  ;;  %v346_v54 = vld [vmem:[%s1917_s23 + $0x8] sm:$0xff]  ;;  %v347_v61 = vld [vmem:[%s1917_s23 + $0x10] sm:$0xff]  ;;  %s1275_s1 = sshll.u32 %s1902_s14, 3  ;;  %vm1092_vm3 = vcmask 523264   ;;  %vm1094_vm4 = vcmask 785408  }
  0x9a   : > { %1317 = vmatmul.mubr.msk.f32.vlgmr.msra.gmra.mrb[0].mxu0 %vm357_vm1, %v353_v4  ;;  %1322 = vmatmul.mubr.msk.f32.vlgmr.msra.gmra.mrb[0].mxu1 %vm357_vm1, %v354_v8  ;;  %v348_v2 = vld [vmem:[%s1917_s23 + $0x18] sm:$0xff]  ;;  %v1004_v8 = vlaneseq  ;;  %s1297_s29 = sshll.u32 %s1696_s19, 7  ;;  %s332_s6 = scalar_lea.vmem [#allocation10], %s1275_s1 }
  0x9b   : > { %1325 = vmatpush3.xpose.msk.msra.mxu0 %vm357_vm1, %v343_v7  ;;  %1326 = vmatprep.mubr.msk.f32.mxu0 %vm1643_vm0, %v1642_v0  ;;  %v1002_v7 = vunpack.c.l.s4 %v1644_v6  ;;  %s1119_s30 = sshll.u32 %s332_s6, 4  ;;  %s1993_s11 = scalar_lea.hbm %s2041_s4, %s1297_s29  ;;  %s1995_s30 = int_to_ptr.vmem [resolvable:$true] %s1119_s30 }
  0x9c   : > { %1330 = vmatpush3.xpose.msk.msra.mxu1 %vm357_vm1, %v344_v10  ;;  %1331 = vmatprep.mubr.msk.f32.mxu1 %vm1643_vm0, %v1642_v0  ;;  %s1105_s19 = scalar_lea.sflag [#allocation4], %s1902_s14  ;;  %s1560_s8 = scalar_lea.vmem %s1995_s30, 128 }
  0x9d   : > { %1334 = vmatprep.subr.mxu0 %v1642_v0  ;;  %1339 = vmatprep.subr.mxu1 %v1642_v0  ;;  %p1561_p13 = scmp.ne.s32.totalorder %s1995_s30, %s1560_s8  ;;  %p2064_p0 = scmp.ne.s32.totalorder %s2052_s26, 0 }
  0x9e   : > { %1327 = vmatmul.mubr.msk.f32.vlgmr.msra.gmra.mrb[2].mxu0 %vm357_vm1, %v355_v11  ;;  %v1645_v11 = vmov 1934713408   ;;  %s1649_s12 = smov [#allocation10]  }
  0x9f   : > { %1332 = vmatmul.mubr.msk.f32.vlgmr.msra.gmra.mrb[2].mxu1 %vm357_vm1, %v356_v12  ;;  %1336 = vmatprep.mubr.msk.f32.mxu0 %vm1643_vm0, %v1642_v0  ;;  %v1034_v12 = vunpack.c.l.s4 %v1645_v11  ;;  %p1562_p8 = pnand %p1561_p13, %p2064_p0  ;;  %s1564_s5 = sshll.u32 %s1649_s12, 4  ;;  %s1565_s5 = int_to_ptr.vmem [resolvable:$false] %s1564_s5 }
  0xa0   : > { %1341 = vmatprep.mubr.msk.f32.mxu1 %vm1643_vm0, %v1642_v0  ;;  %1335 = vmatpush3.msra.mxu0 %v345_v53  ;;  %s1566_s28 = scalar_lea.vmem %s1565_s5, 256  ;;  %p1567_p11 = scmp.lt.s32.totalorder %s1995_s30, %s1565_s5 }
  0xa1   : > { %1344 = vmatprep.subr.mxu0 %v1642_v0  ;;  %1340 = vmatpush3.msra.mxu1 %v346_v54  ;;  %p1563_p10 = pneg %p1562_p8  ;;  %p1568_p4 = scmp.lt.s32.totalorder %s1566_s28, %s1560_s8 }
  0xa2   : > { %1349 = vmatprep.subr.mxu1 %v1642_v0 }
  0xa3   : > { %p1569_p3 = por %p1568_p4, %p1567_p11 }
  0xa5   : > { %p1570_p5 = pnand %p1569_p3, %p1563_p10 }
 0x16d   : > { %v430_v15 = vpop.f32.mrb[0].mxu0  ;;  %v506_v16 = vpop.f32.mrb[0].mxu1 }
 0x16e   : > { %v431_v17 = vadd.f32 %v430_v15, %v349_v13  ;;  %v1318_v18 = vpop.f32.mrb[1].mxu0  ;;  %v507_v19 = vadd.f32 %v506_v16, %v350_v14  ;;  %v1323_v20 = vpop.f32.mrb[1].mxu1  ;;  %v1003_v13 = vunpack.c.0.s8 %v1002_v7  ;;  %v1005_v14 = vshrl.u32 %v1004_v8, 7 }
 0x170   : > { %v663_v22 = vsel %vm662_vm2, %v431_v17, -inf  ;;  %v666_v28 = vsel %vm662_vm2, %v507_v19, -inf }
 0x171   : > { %664 = vmax.xlane.f32.xlu0 %v663_v22  ;;  %v582_v24 = vpop.f32.mrb[2].mxu0  ;;  %v1006_v22 = vsub.s32 %v1003_v13, %v1005_v14 }
 0x172   : > { %v583_v25 = vadd.f32 %v582_v24, %v351_v21  ;;  %v1328_v26 = vpop.f32.mrb[3].mxu0  ;;  %v658_v27 = vpop.f32.mrb[2].mxu1  ;;  %v1035_v21 = vunpack.c.0.s8 %v1034_v12 }
 0x173   : > { %v659_v29 = vadd.f32 %v658_v27, %v352_v23  ;;  %v1333_v30 = vpop.f32.mrb[3].mxu1 }
 0x174   : > { %v669_v31 = vsel %vm662_vm2, %v583_v25, -inf  ;;  %v1038_v27 = vsub.s32 %v1035_v21, %v1005_v14 }
 0x175   : > { %667 = vmax.xlane.f32.xlu0 %v666_v28  ;;  %670 = vmax.xlane.f32.xlu1 %v669_v31  ;;  %v672_v32 = vsel %vm662_vm2, %v659_v29, -inf }
 0x179   : > { %673 = vmax.xlane.f32.xlu1 %v672_v32 }
 0x1fe   : > { %v665_v33 = vpop.xlane.xlu0 %664 }
 0x1ff   : > { %v675_v34 = vsub.f32 %v431_v17, %v665_v33 }
 0x201   : > { %v679_v35 = vmul.f32 1.442695, %v675_v34 }
 0x202   : > { %v668_v36 = vpop.xlane.xlu0 %667  ;;  %v671_v37 = vpop.xlane.xlu1 %670 }
 0x203   : > { %1424 = vpow2.f32 %v679_v35  ;;  %v676_v38 = vsub.f32 %v507_v19, %v668_v36  ;;  %v677_v39 = vsub.f32 %v583_v25, %v671_v37 }
 0x205   : > { %v681_v40 = vmul.f32 1.442695, %v676_v38  ;;  %v683_v41 = vmul.f32 1.442695, %v677_v39 }
 0x206   : > { %v674_v42 = vpop.xlane.xlu1 %673 }
 0x207   : > { %1426 = vpow2.f32 %v681_v40  ;;  %v678_v43 = vsub.f32 %v659_v29, %v674_v42 }
 0x208   : > { %1428 = vpow2.f32 %v683_v41 }
 0x209   : > { %v685_v44 = vmul.f32 1.442695, %v678_v43 }
 0x20b   : > { %1430 = vpow2.f32 %v685_v44 }
 0x20d   : > { %v1425_v45 = vpop.eup %1424 }
 0x20e   : > { %v687_v46 = vsel %vm662_vm2, %v1425_v45, 0.0 }
 0x20f   : > { %688 = vadd.xlane.f32.xlu0 %v687_v46 }
 0x211   : > { %v1427_v47 = vpop.eup %1426 }
 0x212   : > { %v1429_v48 = vpop.eup %1428  ;;  %v690_v49 = vsel %vm662_vm2, %v1427_v47, 0.0 }
 0x213   : > { %691 = vadd.xlane.f32.xlu1 %v690_v49  ;;  %v693_v50 = vsel %vm662_vm2, %v1429_v48, 0.0 }
 0x214   : > { %694 = vadd.xlane.f32.xlu0 %v693_v50 }
 0x215   : > { %v1431_v51 = vpop.eup %1430 }
 0x216   : > { %v696_v52 = vsel %vm662_vm2, %v1431_v51, 0.0 }
 0x217   : > { %697 = vadd.xlane.f32.xlu1 %v696_v52 }
 0x29c   : > { %v689_v55 = vpop.xlane.xlu0 %688 }
 0x29d   : > { %1432 = vrcp.f32 %v689_v55 }
 0x2a0   : > { %v692_v56 = vpop.xlane.xlu1 %691 }
 0x2a1   : > { %v695_v57 = vpop.xlane.xlu0 %694  ;;  %1434 = vrcp.f32 %v692_v56 }
 0x2a2   : > { %1436 = vrcp.f32 %v695_v57 }
 0x2a4   : > { %v698_v58 = vpop.xlane.xlu1 %697 }
 0x2a5   : > { %1438 = vrcp.f32 %v698_v58 }
 0x2a7   : > { %v1433_v59 = vpop.eup %1432 }
 0x2a8   : > { %v703_v60 = vmul.f32 %v1433_v59, %v1425_v45 }
 0x2aa   : > { %1337 = vmatmul.mubr.msk.f32.vlgmr.msra.gmra.mrb[4].mxu0 %vm662_vm2, %v703_v60 }
 0x2ab   : > { %v1435_v62 = vpop.eup %1434  ;;  %1345 = vmatpush3.msra.mxu0 %v347_v61  ;;  %1346 = vmatprep.mubr.msk.f32.mxu0 %vm1643_vm0, %v1642_v0 }
 0x2ac   : > { %v1437_v63 = vpop.eup %1436  ;;  %v704_v1 = vmul.f32 %v1435_v62, %v1427_v47 }
 0x2ad   : > { %v705_v3 = vmul.f32 %v1437_v63, %v1429_v48 }
 0x2ae   : > { %1342 = vmatmul.mubr.msk.f32.vlgmr.msra.gmra.mrb[4].mxu1 %vm662_vm2, %v704_v1 }
 0x2af   : > { %v1439_v4 = vpop.eup %1438  ;;  %1347 = vmatmul.mubr.msk.f32.vlgmr.msra.gmra.mrb[6].mxu0 %vm662_vm2, %v705_v3  ;;  %1350 = vmatpush3.msra.mxu1 %v348_v2 }
 0x2b0   : > { %v706_v5 = vmul.f32 %v1439_v4, %v1431_v51  ;;  %1351 = vmatprep.mubr.msk.f32.mxu1 %vm1643_vm0, %v1642_v0 }
 0x2b2   : > { %1352 = vmatmul.mubr.msk.f32.vlgmr.msra.gmra.mrb[6].mxu1 %vm662_vm2, %v706_v5 }
 0x37d   : > { %v776_v9 = vpop.f32.mrb[4].mxu0 }
 0x37e   : > { %v1338_v10 = vpop.f32.mrb[5].mxu0 }
 0x381   : > { %v849_v15 = vpop.f32.mrb[4].mxu1 }
 0x382   : > { %v922_v16 = vpop.f32.mrb[6].mxu0  ;;  %v1343_v17 = vpop.f32.mrb[5].mxu1 }
 0x383   : > { %v999_v18 = vcombine.low %v776_v9, %v922_v16  ;;  %v1000_v19 = vcombine.high %v776_v9, %v922_v16  ;;  %v1348_v20 = vpop.f32.mrb[7].mxu0 }
 0x385   : > { %v995_v23 = vpop.f32.mrb[6].mxu1  ;;  %v1007_v28 = vrot.slane %v999_v18, %v1006_v22  ;;  %v1014_v29 = vrot.slane %v1000_v19, %v1006_v22 }
 0x386   : > { %v1015_v24 = vcombine.low %v849_v15, %v995_v23  ;;  %v1016_v25 = vcombine.high %v849_v15, %v995_v23  ;;  %v1353_v26 = vpop.f32.mrb[7].mxu1 }
 0x388   : > { %v1023_v30 = vrot.slane %v1015_v24, %v1006_v22  ;;  %v1030_v31 = vrot.slane %v1016_v25, %v1006_v22 }
 0x38a   : > { %v1031_v32 = vcombine.low %v1007_v28, %v1023_v30  ;;  %v1032_v33 = vcombine.high %v1007_v28, %v1023_v30  ;;  %v1047_v34 = vcombine.low %v1014_v29, %v1030_v31  ;;  %v1048_v35 = vcombine.high %v1014_v29, %v1030_v31 }
 0x38c   : > { %v1046_v36 = vrot.slane %v1032_v33, %v1038_v27  ;;  %v1039_v37 = vrot.slane %v1031_v32, %v1038_v27  ;;  %v1062_v39 = vrot.slane %v1048_v35, %v1038_v27  ;;  %v1055_v40 = vrot.slane %v1047_v34, %v1038_v27 }
 0x38e   : > { %1072 = vrot.lane.b32.xlu1 %v1046_v36, %s1646_s25  ;;  %v1063_v38 = vcombine.high %v1039_v37, %v1642_v0  ;;  %v1064_v41 = vcombine.high %v1046_v36, %v1642_v0  ;;  %v1065_v42 = vcombine.high %v1055_v40, %v1642_v0  ;;  %v1066_v43 = vcombine.high %v1062_v39, %v1642_v0 }
 0x390   : > { %1068 = vrot.lane.b32.xlu0 %v1063_v38, %s1647_s24 }
 0x392   : > { %1084 = vrot.lane.b32.xlu1 %v1062_v39, %s1646_s25 }
 0x394   : > { %1076 = vrot.lane.b32.xlu0 %v1064_v41, %s1648_s20 }
 0x396   : > { %1080 = vrot.lane.b32.xlu1 %v1065_v42, %s1647_s24 }
 0x39a   : > { %1088 = vrot.lane.b32.xlu1 %v1066_v43, %s1648_s20 }
 0x400   : > { %v1073_v44 = vpop.permute.xlu1 %1072 }
 0x402   : > { %v1069_v45 = vpop.permute.xlu0 %1068 }
 0x403   : > { %v1091_v48 = vsel %vm357_vm1, %v1039_v37, %v1069_v45 }
 0x404   : > { %v1085_v46 = vpop.permute.xlu1 %1084  ;;  %v1093_v51 = vsel %vm1092_vm3, %v1091_v48, %v1073_v44 }
 0x406   : > { %v1077_v50 = vpop.permute.xlu0 %1076 }
 0x407   : > { %v1095_v53 = vsel %vm1094_vm4, %v1093_v51, %v1077_v50 }
 0x408   : > { %v1081_v47 = vpop.permute.xlu1 %1080 }
 0x409   : > { %v1096_v49 = vsel %vm357_vm1, %v1055_v40, %v1081_v47 }
 0x40a   : > { %v1097_v0 = vsel %vm1092_vm3, %v1096_v49, %v1085_v46 }
 0x40c   : > { %v1089_v52 = vpop.permute.xlu1 %1088 }
 0x40d   : > { %v1098_v54 = vsel %vm1094_vm4, %v1097_v0, %v1089_v52 }
 0x40e   : > { %v1101_v55 = vcombine.low %v1095_v53, %v1098_v54 }
 0x410   : > { %1103 = vst [vmem:[%s332_s6] sm:$0xff] %v1101_v55 }
 0x411   : > { %1573 = shalt.err (!%p1570_p5)
}
 0x412   : > { %s1574_s14 = scalar_lea.hbm %s1993_s11, 128  ;;  %s1578_s23 = scalar_lea.hbm %s2041_s4, 256 }
 0x413   : > { %p1575_p1 = scmp.ne.s32.totalorder %s1993_s11, %s1574_s14  ;;  %p1579_p12 = scmp.lt.u32.totalorder %s1993_s11, %s2041_s4 }
 0x414   : > { %p1580_p2 = scmp.lt.u32.totalorder %s1578_s23, %s1574_s14  ;;  %p1582_p13 = scmp.lt.u32.totalorder %s1574_s14, %s1993_s11 }
 0x415   : > { %p1576_p7 = pnand %p1575_p1, %p2064_p0 }
 0x416   : > { %p1581_p6 = por %p1580_p2, %p1579_p12 }
 0x417   : > { %p1577_p9 = pneg %p1576_p7 }
 0x418   : > { %p1583_p8 = por %p1582_p13, %p1581_p6 }
 0x41a   : > { %p1584_p10 = pnand %p1583_p8, %p1577_p9 }
 0x41c   : > { %1587 = shalt.err (!%p1584_p10)
}
 0x41d   : > { %1362 = dma.vmem_to_hbm [thread:$0]  (%p2064_p0), %s1995_s30, 128, %s1993_s11, %s1105_s19  }
 0x41e PF: > { %s1131_s25 = sand.u32 1, %s1622_s15   ;;  %p2065_p11 = scmp.ne.s32.totalorder %s2053_s27, 0 }
 0x41f   : > { %p2066_p4 = scmp.ge.s32.totalorder %s1634_s18, 2  ;;  %s1132_s24 = scalar_lea.sflag [#allocation4], %s1131_s25 }
 0x421   : > { %p1378_p3 = pnand %p2066_p4, %p2065_p11 }
 0x423   : > { %1617 = dma.done.wait (!%p1378_p3), %s1132_s24, 128  }
 0x424   : > { %1619 = vsyncadd (!%p1378_p3), %s1132_s24, 4294967168  ;;  %s2067_s20 = sld [smem:[#allocation15_spill]]  ;;  %p23_p5 = scmp.ge.s32.totalorder %s1700_s21, 4  }
 0x425   : > { %s2068_s15 = smov %s1626_s16  ;;  %s2069_s16 = smov %s1630_s17 }
 0x426   : > { %s2071_s18 = smov %s1700_s21  ;;  %25 = sbr.rel (!%p23_p5) target bundleno = 12 (0xc), region = 118 }
 0x42a   : > { %s2070_s17 = smov %s2067_s20 }
 0x42d   :  { %1137 = vsyncpa [#allocation3], 1 }
 0x42e   :  { %1139 = vsyncpa [#allocation3 + $0x1], 1 }
 0x42f   :  { %1140 = vsyncpa [#allocation6], 1 }
 0x430   :  { %1142 = vsyncpa [#allocation6 + $0x1], 1 }
 0x431   :  { %1143 = vsyncpa [#allocation9], 1 }
 0x432   :  { %1145 = vsyncpa [#allocation9 + $0x1], 1 }
 0x433   :  { %1146 = vsyncpa [#allocation4], 1 }
 0x434   :  { %1148 = vsyncpa [#allocation4 + $0x1], 1 }

</bundles_post_ra>
